<compile_context>
chip_gen: v7x
topology: tpu7x:2x2x1
jax: 0.10.0
libtpu: 0.0.40
codegen_flags: <defaults>
</compile_context>

<pallas_src>
import math
import jax
import jax.numpy as jnp
from jax.experimental import pallas as pl
from jax.experimental.pallas import tpu as pltpu


# ---------------------------------------------------------------------------
# helpers
# ---------------------------------------------------------------------------

def _round_up(v, m):
    return ((v + m - 1) // m) * m


def _pad2d(a, mp, np_):
    m, n = a.shape
    if m == mp and n == np_:
        return a
    return jnp.pad(a, ((0, mp - m), (0, np_ - n)))


def _pick_tile(dim, max_tile, gran):
    """Return (tile, padded_dim).  Prefer tiles that divide `dim` exactly so no
    host-side pad / slice HBM round trip is generated: full dim if it fits,
    else the largest multiple of `gran` <= max_tile dividing dim, else pad."""
    if dim <= max_tile:
        return dim, dim
    t = (max_tile // gran) * gran
    while t >= gran:
        if dim % t == 0:
            return t, dim
        t -= gran
    t = max((max_tile // gran) * gran, gran)
    return t, _round_up(dim, t)


# ---------------------------------------------------------------------------
# fused tiled linear kernel:
#   y = [postLN]( act( [preLN](x) @ W + b ) [+ residual] )
# ---------------------------------------------------------------------------

def fused_linear(x, w, b, *, ln=None, post_ln=None, act=None, residual=None,
                 out_dtype=jnp.float32, tm=512, tn=512, tk=512):
    """x:(M,K) f32/bf16, w:(K,N) bf16, b:(N,) f32, residual:(M,N) or None.
    ln      = (gamma(K,), beta(K,), eps): LayerNorm fused on the matmul INPUT
              (K kept untiled so mean/var see the full row; LN'd tile cached in
              VMEM and reused across N tiles).
    post_ln = (gamma(N,), beta(N,), eps): LayerNorm fused on the matmul OUTPUT
              (requires the whole N dim in one tile).
    MXU operands are bf16, accumulation / LN / epilogue math is f32."""
    M, K = x.shape
    K2, N = w.shape
    assert K == K2
    has_ln = ln is not None
    has_pln = post_ln is not None
    has_res = residual is not None

    w = w.astype(jnp.bfloat16)          # no-op with prepared (bf16) params
    b = b.astype(jnp.float32)

    tm_e, Mp = _pick_tile(M, tm, 16)
    tn_e, Np = _pick_tile(N, tn, 128)
    if has_ln:
        tk_e, Kp = K, K                 # pre-LN needs the whole (unpadded) row
    else:
        tk_e, Kp = _pick_tile(K, tk, 128)
    nk = Kp // tk_e
    if has_pln:
        assert tn_e == N and Np == N, "post_ln needs the full N dim in one tile"

    xp = _pad2d(x, Mp, Kp)
    wp = _pad2d(w, Kp, Np)
    bp = (jnp.pad(b, (0, Np - N)) if Np != N else b).reshape(1, Np)

    operands = [xp, wp, bp]
    in_specs = [
        pl.BlockSpec((tm_e, tk_e), lambda i, j, k: (i, k)),
        pl.BlockSpec((tk_e, tn_e), lambda i, j, k: (k, j)),
        pl.BlockSpec((1, tn_e), lambda i, j, k: (0, j)),
    ]
    if has_ln:
        g, be, ln_eps = ln
        operands += [g.reshape(1, K).astype(jnp.float32),
                     be.reshape(1, K).astype(jnp.float32)]
        in_specs += [pl.BlockSpec((1, K), lambda i, j, k: (0, 0)),
                     pl.BlockSpec((1, K), lambda i, j, k: (0, 0))]
    else:
        ln_eps = 0.0
    if has_pln:
        pg, pb, pln_eps = post_ln
        operands += [pg.reshape(1, N).astype(jnp.float32),
                     pb.reshape(1, N).astype(jnp.float32)]
        in_specs += [pl.BlockSpec((1, tn_e), lambda i, j, k: (0, j)),
                     pl.BlockSpec((1, tn_e), lambda i, j, k: (0, j))]
    else:
        pln_eps = 0.0
    if has_res:
        operands.append(_pad2d(residual, Mp, Np))
        in_specs.append(pl.BlockSpec((tm_e, tn_e), lambda i, j, k: (i, j)))

    scratch_shapes = []
    if has_ln:
        scratch_shapes.append(pltpu.VMEM((tm_e, K), jnp.bfloat16))    # cached LN(x)
    elif nk > 1:
        scratch_shapes.append(pltpu.VMEM((tm_e, tn_e), jnp.float32))  # f32 accumulator

    def kernel(*refs):
        pos = 0
        x_ref, w_ref, b_ref = refs[0], refs[1], refs[2]
        pos = 3
        if has_ln:
            g_ref, be_ref = refs[pos], refs[pos + 1]
            pos += 2
        if has_pln:
            pg_ref, pb_ref = refs[pos], refs[pos + 1]
            pos += 2
        if has_res:
            r_ref = refs[pos]
            pos += 1
        o_ref = refs[pos]
        scratch = refs[pos + 1:]

        def epilogue(acc):
            y = acc + b_ref[...]
            if act == "gelu":                 # exact (erf) GELU, as torch.nn.GELU()
                y = 0.5 * y * (1.0 + jax.lax.erf(y * 0.7071067811865476))
            if has_res:
                y = y + r_ref[...].astype(jnp.float32)
            if has_pln:                        # LayerNorm over the output features
                mu = jnp.mean(y, axis=-1, keepdims=True)
                yc = y - mu
                var = jnp.mean(yc * yc, axis=-1, keepdims=True)
                y = yc * jax.lax.rsqrt(var + pln_eps) * pg_ref[...] + pb_ref[...]
            o_ref[...] = y.astype(o_ref.dtype)

        if has_ln:
            # K untiled; LN'd input tile computed once per M tile (j == 0) and
            # reused for every N tile (grid j is "arbitrary" -> order guaranteed).
            xln_ref = scratch[0]

            @pl.when(pl.program_id(1) == 0)
            def _():
                xb = x_ref[...].astype(jnp.float32)
                mu = jnp.mean(xb, axis=-1, keepdims=True)
                xc = xb - mu
                var = jnp.mean(xc * xc, axis=-1, keepdims=True)
                y = xc * jax.lax.rsqrt(var + ln_eps) * g_ref[...] + be_ref[...]
                xln_ref[...] = y.astype(jnp.bfloat16)

            epilogue(jnp.dot(xln_ref[...], w_ref[...],
                             preferred_element_type=jnp.float32))
        elif nk == 1:
            # single K step: no VMEM accumulator store/reload round trip
            epilogue(jnp.dot(x_ref[...].astype(jnp.bfloat16), w_ref[...],
                             preferred_element_type=jnp.float32))
        else:
            acc_ref = scratch[0]
            kk = pl.program_id(2)

            @pl.when(kk == 0)
            def _():
                acc_ref[...] = jnp.zeros_like(acc_ref)

            acc_ref[...] += jnp.dot(x_ref[...].astype(jnp.bfloat16), w_ref[...],
                                    preferred_element_type=jnp.float32)

            @pl.when(kk == nk - 1)
            def _():
                epilogue(acc_ref[...])

    dims = ("parallel", "arbitrary", "arbitrary") if has_ln \
        else ("parallel", "parallel", "arbitrary")
    bytes_acc = int(xp.size * xp.dtype.itemsize + wp.size * wp.dtype.itemsize
                    + Mp * Np * jnp.dtype(out_dtype).itemsize
                    + (Mp * Np * 4 if has_res else 0))
    out = pl.pallas_call(
        kernel,
        out_shape=jax.ShapeDtypeStruct((Mp, Np), out_dtype),
        grid=(Mp // tm_e, Np // tn_e, nk),
        in_specs=in_specs,
        out_specs=pl.BlockSpec((tm_e, tn_e), lambda i, j, k: (i, j)),
        scratch_shapes=scratch_shapes,
        compiler_params=pltpu.CompilerParams(dimension_semantics=dims),
        cost_estimate=pl.CostEstimate(
            flops=2 * Mp * Np * Kp,
            transcendentals=Mp * Np if act == "gelu" else 0,
            bytes_accessed=bytes_acc),
    )(*operands)

    if Mp != M or Np != N:
        out = out[:M, :N]
    return out


# ---------------------------------------------------------------------------
# standalone tiled LayerNorm (only where it cannot be fused into a matmul)
# ---------------------------------------------------------------------------

def layernorm(x2d, gamma, beta, eps, out_dtype=jnp.float32, tm=1024):
    M, C = x2d.shape
    tm_e, Mp = _pick_tile(M, tm, 16)
    xp = _pad2d(x2d, Mp, C)
    g2 = gamma.reshape(1, C).astype(jnp.float32)
    b2 = beta.reshape(1, C).astype(jnp.float32)

    def kernel(x_ref, g_ref, b_ref, o_ref):
        x = x_ref[...].astype(jnp.float32)
        mu = jnp.mean(x, axis=-1, keepdims=True)
        xc = x - mu
        var = jnp.mean(xc * xc, axis=-1, keepdims=True)
        o_ref[...] = (xc * jax.lax.rsqrt(var + eps) * g_ref[...]
                      + b_ref[...]).astype(o_ref.dtype)

    out = pl.pallas_call(
        kernel,
        out_shape=jax.ShapeDtypeStruct((Mp, C), out_dtype),
        grid=(Mp // tm_e,),
        in_specs=[pl.BlockSpec((tm_e, C), lambda i: (i, 0)),
                  pl.BlockSpec((1, C), lambda i: (0, 0)),
                  pl.BlockSpec((1, C), lambda i: (0, 0))],
        out_specs=pl.BlockSpec((tm_e, C), lambda i: (i, 0)),
        compiler_params=pltpu.CompilerParams(dimension_semantics=("parallel",)),
    )(xp, g2, b2)
    return out[:M] if Mp != M else out


# ---------------------------------------------------------------------------
# GSA attention kernel: grid over (B, Nq-tiles); attention scale is pre-folded
# into the q projection; one lane-dense (tq, C) output store per tile.
# ---------------------------------------------------------------------------

def gsa_attention(q_tok, kv_tok, num_heads, tq=256):
    """q_tok:(B,Nq,C) bf16 (already scaled), kv_tok:(B,Nk,2C) bf16 -> (B,Nq,C) bf16."""
    B, Nq, C = q_tok.shape
    Nk = kv_tok.shape[1]
    Dh = C // num_heads
    tq_e, Nqp = _pick_tile(Nq, tq, 16)
    qp = jnp.pad(q_tok, ((0, 0), (0, Nqp - Nq), (0, 0))) if Nqp != Nq else q_tok

    def kernel(q_ref, kv_ref, o_ref):
        qb = q_ref[0]              # (tq, C)   bf16
        kvb = kv_ref[0]            # (Nk, 2C)  bf16
        kb = kvb[:, :C]            # full-width slabs sliced once
        vb = kvb[:, C:]
        outs = []
        for h in range(num_heads):
            lo, hi = h * Dh, (h + 1) * Dh
            # scores: 'qd,kd->qk' (contraction on head_dim), f32 accumulation
            s = jax.lax.dot_general(qb[:, lo:hi], kb[:, lo:hi],
                                    (((1,), (1,)), ((), ())),
                                    preferred_element_type=jnp.float32)
            s = s - jnp.max(s, axis=-1, keepdims=True)
            p = jnp.exp(s)
            p = p * pl.reciprocal(jnp.sum(p, axis=-1, keepdims=True), approx=True)
            outs.append(jnp.dot(p.astype(jnp.bfloat16), vb[:, lo:hi],
                                preferred_element_type=jnp.float32))
        # single lane-dense (tq, C) store instead of per-head 64-lane slices
        o_full = outs[0] if num_heads == 1 else jnp.concatenate(outs, axis=-1)
        o_ref[0] = o_full.astype(o_ref.dtype)

    out = pl.pallas_call(
        kernel,
        out_shape=jax.ShapeDtypeStruct((B, Nqp, C), jnp.bfloat16),
        grid=(B, Nqp // tq_e),
        in_specs=[pl.BlockSpec((1, tq_e, C), lambda b, i: (b, i, 0)),
                  pl.BlockSpec((1, Nk, 2 * C), lambda b, i: (b, 0, 0))],
        out_specs=pl.BlockSpec((1, tq_e, C), lambda b, i: (b, i, 0)),
        compiler_params=pltpu.CompilerParams(
            dimension_semantics=("parallel", "parallel")),
    )(qp, kv_tok)
    return out[:, :Nq] if Nqp != Nq else out


# ---------------------------------------------------------------------------
# PosConv: depthwise 3x3 conv (stride 1, pad 1, groups=C) with fused residual
# ---------------------------------------------------------------------------

def pos_conv(x_tok, size, w33c, bias):
    """x_tok:(B,N,C) f32; w33c:(3,3,C); bias:(C,)."""
    B, N, C = x_tok.shape
    H, W = size
    x = x_tok.reshape(B, H, W, C)
    xp = jnp.pad(x, ((0, 0), (1, 1), (1, 1), (0, 0)))    # halo pad (tiny, host-side)
    b2 = bias.reshape(1, 1, C)

    # TODO(synk): the 9 shifted slices below each materialize a VMEM copy; a
    # row-stripe / pltpu.roll formulation would avoid this, but PosConv runs only
    # once per stage so the simple, known-good form is kept.
    def kernel(xp_ref, w_ref, b_ref, o_ref):
        xpb = xp_ref[0]                    # (H+2, W+2, C)
        wf = w_ref[...]                    # (3, 3, C)
        acc = xpb[1:1 + H, 1:1 + W, :]     # residual (stride == 1 branch)
        for di in range(3):
            for dj in range(3):
                acc = acc + xpb[di:di + H, dj:dj + W, :] * wf[di, dj]
        o_ref[0] = acc + b_ref[...]

    out = pl.pallas_call(
        kernel,
        out_shape=jax.ShapeDtypeStruct((B, H, W, C), jnp.float32),
        grid=(B,),
        in_specs=[pl.BlockSpec((1, H + 2, W + 2, C), lambda b: (b, 0, 0, 0)),
                  pl.BlockSpec((3, 3, C), lambda b: (0, 0, 0)),
                  pl.BlockSpec((1, 1, C), lambda b: (0, 0, 0))],
        out_specs=pl.BlockSpec((1, H, W, C), lambda b: (b, 0, 0, 0)),
        compiler_params=pltpu.CompilerParams(dimension_semantics=("parallel",)),
    )(xp, w33c, b2)
    return out.reshape(B, N, C)


# ---------------------------------------------------------------------------
# glue: conv with kernel == stride  ==  patchify reshape + fused matmul
# ---------------------------------------------------------------------------

def patchify_nchw(x_nchw, p):
    """NCHW image -> rows (B*Ho*Wo, C*p*p) in (c, i, j) column order."""
    B, C, H, W = x_nchw.shape
    Ho, Wo = H // p, W // p
    xr = x_nchw.reshape(B, C, Ho, p, Wo, p).transpose(0, 2, 4, 1, 3, 5)
    return xr.reshape(B * Ho * Wo, C * p * p), (Ho, Wo)


def patchify_tokens(x_tok, size, p):
    """(B,N,C) tokens on an HxW grid -> rows (B*Ho*Wo, C*p*p), (c, i, j) order."""
    B, N, C = x_tok.shape
    H, W = size
    Ho, Wo = H // p, W // p
    xr = x_tok.reshape(B, Ho, p, Wo, p, C).transpose(0, 1, 3, 5, 2, 4)
    return xr.reshape(B * Ho * Wo, C * p * p), (Ho, Wo)


# ---------------------------------------------------------------------------
# model forward
# ---------------------------------------------------------------------------

def block_forward(x_tok, size, p, num_heads, sr_ratio):
    """Block = x + GSA(norm1(x)) ; x + MLP(norm2(x)).  Dropout/DropPath = identity."""
    B, N, C = x_tok.shape
    x2d = x_tok.reshape(B * N, C)                 # f32 residual stream
    ln1 = (p["n1_w"], p["n1_b"], 1e-6)

    if sr_ratio > 1:
        # norm1(x) feeds both q and the sr conv path -> materialize it once (bf16)
        h2d = layernorm(x2d, p["n1_w"], p["n1_b"], 1e-6, out_dtype=jnp.bfloat16)
        q2d = fused_linear(h2d, p["q_w"], p["q_b"], out_dtype=jnp.bfloat16)
        hr, _ = patchify_tokens(h2d.reshape(B, N, C), size, sr_ratio)
        x_sr = fused_linear(hr, p["sr_w2d"], p["sr_b"], out_dtype=jnp.bfloat16)
        kv2d = fused_linear(x_sr, p["kv_w"], p["kv_b"],
                            ln=(p["srn_w"], p["srn_b"], 1e-5),   # fused sr-LN
                            out_dtype=jnp.bfloat16)
        Nk = x_sr.shape[0] // B
    else:
        # fuse norm1 into both projections (recomputed, never materialized)
        q2d = fused_linear(x2d, p["q_w"], p["q_b"], ln=ln1, out_dtype=jnp.bfloat16)
        kv2d = fused_linear(x2d, p["kv_w"], p["kv_b"], ln=ln1, out_dtype=jnp.bfloat16)
        Nk = N

    o = gsa_attention(q2d.reshape(B, N, C), kv2d.reshape(B, Nk, 2 * C), num_heads)
    # attn output projection with fused residual add (back to f32 residual stream)
    x2d = fused_linear(o.reshape(B * N, C), p["proj_w"], p["proj_b"], residual=x2d)

    # MLP with fused norm2 + GELU, bf16 hidden, fused residual on fc2
    h = fused_linear(x2d, p["fc1_w"], p["fc1_b"],
                     ln=(p["n2_w"], p["n2_b"], 1e-6), act="gelu",
                     out_dtype=jnp.bfloat16)
    x2d = fused_linear(h, p["fc2_w"], p["fc2_b"], residual=x2d)
    return x2d.reshape(B, N, C)


def twins_forward(x_nchw, params, cfg):
    B = x_nchw.shape[0]
    num_stages = len(cfg["depths"])
    x_tok, size, C = None, None, None
    for i in range(num_stages):
        pe = params["patch_embeds"][i]
        p_sz = cfg["patch_sizes"][i]
        if i == 0:
            xr, size = patchify_nchw(x_nchw, p_sz)
        else:
            xr, size = patchify_tokens(x_tok, size, p_sz)
        xr = xr.astype(jnp.bfloat16)
        C = pe["w2d"].shape[1]
        # patch-embed projection with fused post-LayerNorm (eps 1e-5)
        y = fused_linear(xr, pe["w2d"], pe["b"],
                         post_ln=(pe["ln_w"], pe["ln_b"], 1e-5))
        x_tok = y.reshape(B, -1, C)
        for j in range(cfg["depths"][i]):
            x_tok = block_forward(x_tok, size, params["blocks"][i][j],
                                  cfg["num_heads"][i], cfg["sr_ratios"][i])
            if j == 0:
                x_tok = pos_conv(x_tok, size,
                                 params["pos"][i]["w"], params["pos"][i]["b"])

    x2d = layernorm(x_tok.reshape(B * x_tok.shape[1], C),
                    params["norm_w"], params["norm_b"], 1e-6)
    pooled = x2d.reshape(B, -1, C).mean(axis=1)   # global_pool='avg' (tiny glue reduce)
    logits = fused_linear(pooled, params["head_w"], params["head_b"])
    return logits


# ---------------------------------------------------------------------------
# deterministic parameter construction (mirrors Twins._init_weights shapes/rules)
# ---------------------------------------------------------------------------

def build_params(key, cfg):
    keys = list(jax.random.split(key, 256))
    ctr = [0]

    def nk():
        k = keys[ctr[0]]
        ctr[0] += 1
        return k

    def trunc_normal(shape, std=0.02):
        return std * jax.random.truncated_normal(nk(), -2.0, 2.0, shape, jnp.float32)

    def conv_init(shape, fan_out):
        return jax.random.normal(nk(), shape, jnp.float32) * math.sqrt(2.0 / fan_out)

    params = {"patch_embeds": [], "blocks": [], "pos": []}
    prev_chs = cfg["in_chans"]
    for i, E in enumerate(cfg["embed_dims"]):
        p = cfg["patch_sizes"][i]
        params["patch_embeds"].append({
            "w": conv_init((E, prev_chs, p, p), p * p * E),
            "b": jnp.zeros((E,), jnp.float32),
            "ln_w": jnp.ones((E,), jnp.float32),
            "ln_b": jnp.zeros((E,), jnp.float32),
        })
        stage_blocks = []
        hidden = int(E * cfg["mlp_ratios"][i])
        sr = cfg["sr_ratios"][i]
        for _ in range(cfg["depths"][i]):
            blk = {
                "n1_w": jnp.ones((E,), jnp.float32), "n1_b": jnp.zeros((E,), jnp.float32),
                "q_w": trunc_normal((E, E)), "q_b": jnp.zeros((E,), jnp.float32),
                "kv_w": trunc_normal((E, 2 * E)), "kv_b": jnp.zeros((2 * E,), jnp.float32),
                "proj_w": trunc_normal((E, E)), "proj_b": jnp.zeros((E,), jnp.float32),
                "n2_w": jnp.ones((E,), jnp.float32), "n2_b": jnp.zeros((E,), jnp.float32),
                "fc1_w": trunc_normal((E, hidden)), "fc1_b": jnp.zeros((hidden,), jnp.float32),
                "fc2_w": trunc_normal((hidden, E)), "fc2_b": jnp.zeros((E,), jnp.float32),
            }
            if sr > 1:
                blk["sr_w"] = conv_init((E, E, sr, sr), sr * sr * E)
                blk["sr_b"] = jnp.zeros((E,), jnp.float32)
                blk["srn_w"] = jnp.ones((E,), jnp.float32)
                blk["srn_b"] = jnp.zeros((E,), jnp.float32)
            stage_blocks.append(blk)
        params["blocks"].append(stage_blocks)
        # PosConv: depthwise 3x3, fan_out = 3*3*E / groups(E) = 9
        params["pos"].append({
            "w": conv_init((3, 3, E), 9),
            "b": jnp.zeros((E,), jnp.float32),
        })
        prev_chs = E

    E_last = cfg["embed_dims"][-1]
    params["norm_w"] = jnp.ones((E_last,), jnp.float32)
    params["norm_b"] = jnp.zeros((E_last,), jnp.float32)
    params["head_w"] = trunc_normal((E_last, cfg["num_classes"]))
    params["head_b"] = jnp.zeros((cfg["num_classes"],), jnp.float32)
    return params


def prepare_params(params, cfg):
    """One-time (outside jit) weight prep: cast matmul weights to bf16, pre-reshape
    conv weights to 2-D matmul form, fold the attention scale into q."""
    bf = lambda a: a.astype(jnp.bfloat16)
    out = {"patch_embeds": [], "blocks": [], "pos": params["pos"],
           "norm_w": params["norm_w"], "norm_b": params["norm_b"],
           "head_w": bf(params["head_w"]), "head_b": params["head_b"]}
    for pe in params["patch_embeds"]:
        E = pe["w"].shape[0]
        out["patch_embeds"].append({
            "w2d": bf(pe["w"].reshape(E, -1).T),
            "b": pe["b"], "ln_w": pe["ln_w"], "ln_b": pe["ln_b"]})
    for i, stage in enumerate(params["blocks"]):
        C = cfg["embed_dims"][i]
        scale = (C // cfg["num_heads"][i]) ** (-0.5)
        sr = cfg["sr_ratios"][i]
        new_stage = []
        for blk in stage:
            nb = {"n1_w": blk["n1_w"], "n1_b": blk["n1_b"],
                  "q_w": bf(blk["q_w"] * scale), "q_b": blk["q_b"] * scale,
                  "kv_w": bf(blk["kv_w"]), "kv_b": blk["kv_b"],
                  "proj_w": bf(blk["proj_w"]), "proj_b": blk["proj_b"],
                  "n2_w": blk["n2_w"], "n2_b": blk["n2_b"],
                  "fc1_w": bf(blk["fc1_w"]), "fc1_b": blk["fc1_b"],
                  "fc2_w": bf(blk["fc2_w"]), "fc2_b": blk["fc2_b"]}
            if sr > 1:
                nb["sr_w2d"] = bf(blk["sr_w"].reshape(C, C * sr * sr).T)
                nb["sr_b"] = blk["sr_b"]
                nb["srn_w"] = blk["srn_w"]
                nb["srn_b"] = blk["srn_b"]
            new_stage.append(nb)
        out["blocks"].append(new_stage)
    return out


# ---------------------------------------------------------------------------
# main
# ---------------------------------------------------------------------------

if __name__ == "__main__":
    # Small Twins config (2 stages), consistent with the module's constructor logic:
    # stage 0: patch 4 on 16x16 -> 4x4 tokens, dim 16, 1 head, sr_ratio 2
    # stage 1: patch 2 on 4x4   -> 2x2 tokens, dim 32, 2 heads, sr_ratio 1
    cfg = dict(
        img_size=16,
        patch_sizes=[4, 2],
        in_chans=3,
        num_classes=10,
        embed_dims=(16, 32),
        num_heads=(1, 2),
        mlp_ratios=(4, 4),
        depths=(2, 2),
        sr_ratios=(2, 1),
    )
    key = jax.random.PRNGKey(0)
    kx, kp, k1, k2, k3, k4, k5, k6 = jax.random.split(key, 8)
    params = build_params(kp, cfg)
    prepped = prepare_params(params, cfg)
    x = jax.random.normal(kx, (2, 3, 16, 16), jnp.float32)

    # --- small self-checks of kernel paths not exercised at the tiny model shapes ---
    # (a) K-tiled accumulator path (nk > 1)
    xa = jax.random.normal(k1, (64, 1024), jnp.float32)
    wa = (0.02 * jax.random.normal(k2, (1024, 256), jnp.float32)).astype(jnp.bfloat16)
    ba = jnp.zeros((256,), jnp.float32)
    ya = fused_linear(xa, wa, ba)
    yref = xa.astype(jnp.bfloat16).astype(jnp.float32) @ wa.astype(jnp.float32)
    assert jnp.allclose(ya, yref, rtol=5e-2, atol=5e-2), "nk>1 matmul path mismatch"

    # (b) fused pre-LN + GELU with the LN'd tile cached across multiple N tiles
    xg = jax.random.normal(k3, (32, 128), jnp.float32)
    wg = (0.02 * jax.random.normal(k4, (128, 1024), jnp.float32)).astype(jnp.bfloat16)
    bg = jnp.zeros((1024,), jnp.float32)
    gw = jnp.ones((128,), jnp.float32)
    gb = jnp.zeros((128,), jnp.float32)
    yg = fused_linear(xg, wg, bg, ln=(gw, gb, 1e-6), act="gelu")
    mu = xg.mean(-1, keepdims=True)
    var = ((xg - mu) ** 2).mean(-1, keepdims=True)
    xln = ((xg - mu) * jax.lax.rsqrt(var + 1e-6)).astype(jnp.bfloat16).astype(jnp.float32)
    ygr = jax.nn.gelu(xln @ wg.astype(jnp.float32), approximate=False)
    assert jnp.allclose(yg, ygr, rtol=5e-2, atol=5e-2), "fused LN path mismatch"

    # (c) attention kernel (scale already folded into q upstream)
    qz = jax.random.normal(k5, (2, 16, 32), jnp.float32).astype(jnp.bfloat16)
    kvz = jax.random.normal(k6, (2, 4, 64), jnp.float32).astype(jnp.bfloat16)

    def attn_ref(q, kv, h):
        B_, Nq_, C_ = q.shape
        Dh_ = C_ // h
        qf = q.astype(jnp.float32).reshape(B_, Nq_, h, Dh_).transpose(0, 2, 1, 3)
        kf = kv[..., :C_].astype(jnp.float32).reshape(B_, -1, h, Dh_).transpose(0, 2, 1, 3)
        vf = kv[..., C_:].astype(jnp.float32).reshape(B_, -1, h, Dh_).transpose(0, 2, 1, 3)
        pz = jax.nn.softmax(jnp.einsum("bhqd,bhkd->bhqk", qf, kf), axis=-1)
        return jnp.einsum("bhqk,bhkd->bhqd", pz, vf).transpose(0, 2, 1, 3).reshape(B_, Nq_, C_)

    oa = gsa_attention(qz, kvz, 2).astype(jnp.float32)
    assert jnp.allclose(oa, attn_ref(qz, kvz, 2), rtol=5e-2, atol=6e-2), "attention mismatch"

    # --- full forward ----------------------------------------------------------
    fwd = jax.jit(lambda img, prm: twins_forward(img, prm, cfg))
    out = jax.block_until_ready(fwd(x, prepped))
    assert out.shape == (2, cfg["num_classes"])
    assert bool(jnp.all(jnp.isfinite(out)))
    # TODO(synk): dropout / DropPath are identity at the module's default rates (0.0); no RNG path implemented.
    # TODO(synk): LocallyGroupedAttn (wss != None) is not implemented; default Twins uses GSA everywhere.
    print("KERNEL_OK")
</pallas_src>

<mosaic_0001>
module attributes {stable_mosaic.version = 11 : i64} {
  func.func @kernel(%arg0: i32, %arg1: i32, %arg2: i32, %arg3: memref<64x512xf32, #tpu.memory_space<vmem>>, %arg4: memref<512x256xbf16, #tpu.memory_space<vmem>>, %arg5: memref<1x256xf32, #tpu.memory_space<vmem>>, %arg6: memref<64x256xf32, #tpu.memory_space<vmem>>, %arg7: memref<64x256xf32, #tpu.memory_space<vmem>>) attributes {dimension_semantics = [#tpu.dimension_semantics<parallel>, #tpu.dimension_semantics<parallel>, #tpu.dimension_semantics<arbitrary>], iteration_bounds = array<i64: 1, 1, 2>, scalar_prefetch = 0 : i64, scratch_operands = 1 : i64, tpu.core_type = #tpu.core_type<tc>, window_params = [{transform_indices = @transform_0, window_bounds = array<i64: 64, 512>}, {transform_indices = @transform_1, window_bounds = array<i64: 512, 256>}, {transform_indices = @transform_2, window_bounds = array<i64: 1, 256>}, {transform_indices = @transform_3, window_bounds = array<i64: 64, 256>}]} {
    %c0_i32 = arith.constant 0 : i32
    %0 = arith.cmpi eq, %arg2, %c0_i32 : i32
    %1 = arith.extui %0 : i1 to i32
    %c0_i32_0 = arith.constant 0 : i32
    %2 = arith.cmpi ne, %1, %c0_i32_0 : i32
    scf.if %2 {
      %cst_9 = arith.constant 0.000000e+00 : f32
      %13 = vector.broadcast %cst_9 : f32 to vector<64x256xf32>
      %c0_10 = arith.constant 0 : index
      %c0_11 = arith.constant 0 : index
      %14 = vector.load %arg7[%c0_10, %c0_11] : memref<64x256xf32, #tpu.memory_space<vmem>>, vector<64x256xf32>
      tpu.vector_store %arg7[%c0_10, %c0_11], %13 {strides = array<i32>} : memref<64x256xf32, #tpu.memory_space<vmem>>, vector<64x256xf32>,
    } else {
    }
    %c0 = arith.constant 0 : index
    %c0_1 = arith.constant 0 : index
    %3 = vector.load %arg7[%c0, %c0_1] : memref<64x256xf32, #tpu.memory_space<vmem>>, vector<64x256xf32>
    %c0_2 = arith.constant 0 : index
    %c0_3 = arith.constant 0 : index
    %4 = vector.load %arg3[%c0_2, %c0_3] : memref<64x512xf32, #tpu.memory_space<vmem>>, vector<64x512xf32>
    %5 = arith.truncf %4 : vector<64x512xf32> to vector<64x512xbf16>
    %c0_4 = arith.constant 0 : index
    %c0_5 = arith.constant 0 : index
    %6 = vector.load %arg4[%c0_4, %c0_5] : memref<512x256xbf16, #tpu.memory_space<vmem>>, vector<512x256xbf16>
    %cst = arith.constant dense<0.000000e+00> : vector<64x256xf32>
    %7 = tpu.matmul %5, %6, %cst {dimension_numbers = #tpu.dot_dimension_numbers<[1], [0], [0], [1], [0, 0, 1, 1], [], []>} : vector<64x512xbf16>, vector<512x256xbf16>, vector<64x256xf32> -> vector<64x256xf32>
    %8 = arith.addf %3, %7 : vector<64x256xf32>
    %c0_6 = arith.constant 0 : index
    %c0_7 = arith.constant 0 : index
    %9 = vector.load %arg7[%c0_6, %c0_7] : memref<64x256xf32, #tpu.memory_space<vmem>>, vector<64x256xf32>
    tpu.vector_store %arg7[%c0_6, %c0_7], %8 {strides = array<i32>} : memref<64x256xf32, #tpu.memory_space<vmem>>, vector<64x256xf32>,
    %c1_i32 = arith.constant 1 : i32
    %10 = arith.cmpi eq, %arg2, %c1_i32 : i32
    %11 = arith.extui %10 : i1 to i32
    %c0_i32_8 = arith.constant 0 : i32
    %12 = arith.cmpi ne, %11, %c0_i32_8 : i32
    scf.if %12 {
      %c0_9 = arith.constant 0 : index
      %c0_10 = arith.constant 0 : index
      %13 = vector.load %arg7[%c0_9, %c0_10] : memref<64x256xf32, #tpu.memory_space<vmem>>, vector<64x256xf32>
      %c0_11 = arith.constant 0 : index
      %c0_12 = arith.constant 0 : index
      %14 = vector.load %arg5[%c0_11, %c0_12] : memref<1x256xf32, #tpu.memory_space<vmem>>, vector<1x256xf32>
      %15 = vector.broadcast %14 : vector<1x256xf32> to vector<64x256xf32>
      %16 = arith.addf %13, %15 : vector<64x256xf32>
      %c0_13 = arith.constant 0 : index
      %c0_14 = arith.constant 0 : index
      %17 = vector.load %arg6[%c0_13, %c0_14] : memref<64x256xf32, #tpu.memory_space<vmem>>, vector<64x256xf32>
      tpu.vector_store %arg6[%c0_13, %c0_14], %16 {strides = array<i32>} : memref<64x256xf32, #tpu.memory_space<vmem>>, vector<64x256xf32>,
    } else {
    }
    return
  }
  func.func @transform_0(%arg0: i32, %arg1: i32, %arg2: i32) -> (i32, i32) {
    %c0_i32 = arith.constant 0 : i32
    return %arg0, %arg2 : i32, i32
  }
  func.func @transform_1(%arg0: i32, %arg1: i32, %arg2: i32) -> (i32, i32) {
    %c0_i32 = arith.constant 0 : i32
    return %arg2, %arg1 : i32, i32
  }
  func.func @transform_2(%arg0: i32, %arg1: i32, %arg2: i32) -> (i32, i32) {
    %c0_i32 = arith.constant 0 : i32
    %c0_i32_0 = arith.constant 0 : i32
    return %c0_i32, %arg1 : i32, i32
  }
  func.func @transform_3(%arg0: i32, %arg1: i32, %arg2: i32) -> (i32, i32) {
    %c0_i32 = arith.constant 0 : i32
    return %arg0, %arg1 : i32, i32
  }
}

</mosaic_0001>

<bundles_post_ra>
// kernel: tpu_custom_call.1
= control target key start
LH: loop header
LB: loop body
LE: loop exit
PB: predicated region body
PF: predicated region fallthrough
CT: control target
= control target key end

     0   :  { %8 = vsyncpa [#allocation4], 0  ;;  %s1866_s0 = inlined_call_operand.hbm [shape: f32[64,1024], index: 0, kind: input, shape index: {}]   ;;  %s1867_s1 = inlined_call_operand.hbm [shape: bf16[1024,256], index: 1, kind: input, shape index: {}]   ;;  %s1868_s2 = inlined_call_operand.vmem [shape: f32[1,256], index: 2, kind: input, shape index: {}]   ;;  %s1869_s3 = inlined_call_operand.hbm [shape: f32[64,256], index: 3, kind: output, shape index: {}]  }
   0x1   :  { %10 = vsyncpa [#allocation4 + $0x1], 0 }
   0x2   :  { %11 = vsyncpa [#allocation7], 0 }
   0x3   :  { %13 = vsyncpa [#allocation7 + $0x1], 0 }
   0x4   :  { %14 = vsyncpa [#allocation5], 0  ;;  %s1562_s12 = smov 0   ;;  %s1564_s13 = smov 0  }
   0x5   :  { %s1566_s14 = smov 0   ;;  %s1568_s15 = smov 0  }
   0x6   :  { %s1570_s16 = smov 0   ;;  %s1572_s17 = smov 0  }
   0x7 LB: > { %s1111_s18 = sadd.s32 4294967295, %s1529_s17   ;;  %s32_s19 = sadd.s32 1, %s1525_s16  ;;  %s1529_s17 = sphi %s1572_s17, %s20_s17   ;;  %s1525_s16 = sphi %s1570_s16, %s1882_s16   ;;  %s1521_s15 = sphi %s1568_s15, %s1881_s15   ;;  %s1517_s14 = sphi %s1566_s14, %s1880_s14   ;;  %s1513_s13 = sphi %s1564_s13, %s1879_s13   ;;  %s1509_s12 = sphi %s1562_s12, %s1878_s12  }
   0x8   : > { %p33_p0 = scmp.ge.s32.totalorder %s32_s19, 2  ;;  %s48_s20 = sadd.s32 1, %s1517_s14 }
   0x9   : > { %p55_p1 = scmp.ne.s32.totalorder %s1517_s14, %s1513_s13  ;;  %p56_p2 = scmp.eq.s32.totalorder %s1529_s17, 0 }
   0xa   : > { %s1884_s19 = smov (%p33_p0, %s32_s19), 0  ;;  %p61_p4 = scmp.ne.s32.totalorder %s1513_s13, %s1509_s12 }
   0xb   : > { %p1598_p3 = por %p56_p2, %p55_p1  ;;  %s44_s22 = ssub.s32 %s1525_s16, %s1884_s19 }
   0xc   : > { %p62_p5 = scmp.eq.s32.totalorder %s1111_s18, 0  ;;  %p46_p6 = scmp.eq.s32.totalorder %s44_s22, 0 }
   0xd   : > { %p1229_p8 = scmp.lt.s32.totalorder %s1529_s17, 2  ;;  %s1616_s25 = sand.u32 1, %s1517_s14  }
   0xe   : > { %p1607_p7 = por %p62_p5, %p61_p4  ;;  %s1195_s26 = sshll.u32 %s1525_s16, 9 }
   0xf   : > { %s1613_s24 = scalar_select %p46_p6, %s1517_s14, %s48_s20  }
  0x10   : > { %s1872_s23 = scalar_select %p1607_p7, 1, 0 }
  0x11   : > { %s1115_s27 = sshll.u32 %s1616_s25, 8  ;;  %s1623_s30 = scalar_lea.hbm %s1866_s0, %s1195_s26 }
  0x12   : > { %s179_s4 = scalar_lea.vmem [#allocation3], %s1115_s27  ;;  %p1627_p9 = pnand %p1229_p8, %p1598_p3 }
  0x13   : > { %s189_s5 = sshll.u32 %s179_s4, 4  ;;  %s176_s7 = scalar_lea.sflag [#allocation4], %s1616_s25  ;;  %s1631_s5 = int_to_ptr.vmem [resolvable:$true] %s189_s5 }
  0x14   : > { %s1385_s8 = scalar_lea.hbm %s1623_s30, 4096  ;;  %p1387_p12 = pneg %p1627_p9 }
  0x15   : > { %p1386_p11 = scmp.ne.s32.totalorder %s1623_s30, %s1385_s8  ;;  %s1390_s11 = scalar_lea.hbm %s1866_s0, 8192 }
  0x16   : > { %p1391_p1 = scmp.lt.u32.totalorder %s1623_s30, %s1866_s0  ;;  %p1392_p2 = scmp.lt.u32.totalorder %s1390_s11, %s1385_s8 }
  0x17   : > { %p1388_p13 = pnand %p1387_p12, %p1386_p11  ;;  %p1394_p4 = scmp.lt.u32.totalorder %s1385_s8, %s1623_s30 }
  0x18   : > { %p1393_p3 = por %p1392_p2, %p1391_p1 }
  0x19   : > { %p1389_p0 = pneg %p1388_p13 }
  0x1a   : > { %p1395_p5 = por %p1394_p4, %p1393_p3 }
  0x1c   : > { %p1396_p6 = pnand %p1395_p5, %p1389_p0 }
  0x1e   : > { %1399 = shalt.err (!%p1396_p6)
}
  0x1f   : > { %s1400_s21 = scalar_lea.vmem %s1631_s5, 4096  ;;  %s1531_s22 = smov [#allocation3]  }
  0x20   : > { %p1401_p8 = scmp.ne.s32.totalorder %s1631_s5, %s1400_s21  ;;  %s1405_s26 = sshll.u32 %s1531_s22, 4  ;;  %s1406_s26 = int_to_ptr.vmem [resolvable:$false] %s1405_s26 }
  0x21   : > { %s1407_s27 = scalar_lea.vmem %s1406_s26, 8192  ;;  %p1408_p10 = scmp.lt.s32.totalorder %s1631_s5, %s1406_s26 }
  0x22   : > { %p1403_p11 = pnand %p1401_p8, %p1387_p12  ;;  %p1409_p1 = scmp.lt.s32.totalorder %s1407_s27, %s1400_s21 }
  0x24   : > { %p1404_p13 = pneg %p1403_p11  ;;  %p1410_p2 = por %p1409_p1, %p1408_p10 }
  0x26   : > { %p1411_p3 = pnand %p1410_p2, %p1404_p13 }
  0x28   : > { %1414 = shalt.err (!%p1411_p3)
}
  0x29   : > { %s1532_s28 = smov 1024   ;;  %s1533_s29 = smov 512  }
  0x2a   : > { %s1534_s4 = smov 32   ;;  %p221_p0 = scmp.lt.s32.totalorder %s1529_s17, 3 }
  0x2b   : > { %1225 = dma.hbm_to_vmem [thread:$0]  (!%p1627_p9), %s1623_s30, 4096, %s1631_s5, %s176_s7, %s1532_s28, %s1533_s29, %s1534_s4  }
  0x2c   : > { %s1118_s8 = sshll.u32 %s1616_s25, 9  ;;  %s1197_s9 = sshll.u32 %s1525_s16, 13 }
  0x2d   : > { %p1874_p10 = scmp.ge.s32.totalorder %s1529_s17, 1  ;;  %s1674_s20 = scalar_lea.hbm %s1867_s1, %s1197_s9 }
  0x2e   : > { %s203_s21 = scalar_lea.vmem [#allocation6], %s1118_s8  ;;  %s200_s30 = scalar_lea.sflag [#allocation7], %s1616_s25 }
  0x2f   : > { %p1667_p4 = pnand %p1874_p10, %p221_p0  ;;  %s213_s22 = sshll.u32 %s203_s21, 4  ;;  %s1676_s22 = int_to_ptr.vmem [resolvable:$true] %s213_s22 }
  0x30   : > { %s1415_s5 = scalar_lea.hbm %s1674_s20, 8192  ;;  %s1420_s27 = scalar_lea.hbm %s1867_s1, 16384 }
  0x31   : > { %p1416_p5 = scmp.ne.s32.totalorder %s1674_s20, %s1415_s5  ;;  %p1421_p11 = scmp.lt.u32.totalorder %s1674_s20, %s1867_s1 }
  0x32   : > { %p1422_p13 = scmp.lt.u32.totalorder %s1420_s27, %s1415_s5  ;;  %p1424_p2 = scmp.lt.u32.totalorder %s1415_s5, %s1674_s20 }
  0x33   : > { %p1418_p6 = pnand %p1416_p5, %p1387_p12 }
  0x34   : > { %p1423_p1 = por %p1422_p13, %p1421_p11 }
  0x35   : > { %p1419_p8 = pneg %p1418_p6 }
  0x36   : > { %p1425_p3 = por %p1424_p2, %p1423_p1 }
  0x38   : > { %p1426_p0 = pnand %p1425_p3, %p1419_p8 }
  0x3a   : > { %1429 = shalt.err (!%p1426_p0)
}
  0x3b   : > { %s1430_s4 = scalar_lea.vmem %s1676_s22, 8192  ;;  %s1535_s8 = smov [#allocation6]  }
  0x3c   : > { %p1431_p10 = scmp.ne.s32.totalorder %s1676_s22, %s1430_s4  ;;  %s1435_s9 = sshll.u32 %s1535_s8, 4  ;;  %s1436_s9 = int_to_ptr.vmem [resolvable:$false] %s1435_s9 }
  0x3d   : > { %s1437_s11 = scalar_lea.vmem %s1436_s9, 16384  ;;  %p1438_p7 = scmp.lt.s32.totalorder %s1676_s22, %s1436_s9 }
  0x3e   : > { %p1433_p5 = pnand %p1431_p10, %p1387_p12  ;;  %p1439_p11 = scmp.lt.s32.totalorder %s1437_s11, %s1430_s4 }
  0x40   : > { %p1434_p6 = pneg %p1433_p5  ;;  %p1440_p13 = por %p1439_p11, %p1438_p7 }
  0x42   : > { %p1441_p1 = pnand %p1440_p13, %p1434_p6 }
  0x44   : > { %1444 = shalt.err (!%p1441_p1)
}
  0x45   : > { %s1536_s12 = smov 128   ;;  %s1537_s21 = smov 8  }
  0x46   : > { %1228 = dma.hbm_to_vmem [thread:$0]  (!%p1627_p9), %s1674_s20, 8192, %s1676_s22, %s200_s30, %s1536_s12, %s1536_s12, %s1537_s21  }
  0x47   : > { %225 = sbr.rel (%p1667_p4) target bundleno = 438 (0x1b6), region = 32  ;;  %s227_s5 = sand.u32 (!%p1667_p4), 1, %s1513_s13  }
  0x48   : > { %s1123_s7 = sshll.u32 (!%p1667_p4), %s227_s5, 8  ;;  %s228_s26 = scalar_lea.sflag (!%p1667_p4), [#allocation4], %s227_s5 }
  0x49   : > { %s1707_s27 = scalar_lea.vmem (!%p1667_p4), [#allocation3], %s1123_s7  ;;  %p1876_p7 = scmp.ne.s32.totalorder (!%p1667_p4), %s1872_s23, 0 }
  0x4e   : > { %1496 = dma.done.wait (%p1876_p7), %s228_s26, 4096  }
  0x4f   : > { %1498 = vsyncadd (%p1876_p7), %s228_s26, 4294963200  ;;  %s1124_s28 = sshll.u32 %s227_s5, 9  ;;  %s237_s6 = scalar_lea.sflag [#allocation7], %s227_s5 }
  0x50   : > { %s1713_s25 = scalar_lea.vmem [#allocation6], %s1124_s28 }
  0x51   : > { %1500 = dma.done.wait (%p1876_p7), %s237_s6, 8192  }
  0x52   : > { %1502 = vsyncadd (%p1876_p7), %s237_s6, 4294959104  ;;  %p1125_p9 = scmp.ne.s32.totalorder %s1521_s15, 0 }
  0x53   : > { %v1538_v0 = vmov (!%p1125_p9), 0.0  }
  0x54   : > { %281 = sbr.rel (%p1125_p9) target bundleno = 92 (0x5c), region = 44  ;;  %282 = vst [vmem:[#allocation2] sm:$0xff] (!%p1125_p9), %v1538_v0  ;;  %283 = vst [vmem:[#allocation2 + $0x8] sm:$0xff] (!%p1125_p9), %v1538_v0 }
  0x55   : > { %284 = vst [vmem:[#allocation2 + $0x10] sm:$0xff] (!%p1125_p9), %v1538_v0  ;;  %285 = vst [vmem:[#allocation2 + $0x18] sm:$0xff] (!%p1125_p9), %v1538_v0 }
  0x56   : > { %286 = vst [vmem:[#allocation2 + $0x20] sm:$0xff] (!%p1125_p9), %v1538_v0  ;;  %287 = vst [vmem:[#allocation2 + $0x28] sm:$0xff] (!%p1125_p9), %v1538_v0 }
  0x57   : > { %288 = vst [vmem:[#allocation2 + $0x30] sm:$0xff] (!%p1125_p9), %v1538_v0  ;;  %289 = vst [vmem:[#allocation2 + $0x38] sm:$0xff] (!%p1125_p9), %v1538_v0 }
  0x58   : > { %290 = vst [vmem:[#allocation2 + $0x40] sm:$0xff] (!%p1125_p9), %v1538_v0  ;;  %291 = vst [vmem:[#allocation2 + $0x48] sm:$0xff] (!%p1125_p9), %v1538_v0 }
  0x59   : > { %292 = vst [vmem:[#allocation2 + $0x50] sm:$0xff] (!%p1125_p9), %v1538_v0  ;;  %293 = vst [vmem:[#allocation2 + $0x58] sm:$0xff] (!%p1125_p9), %v1538_v0 }
  0x5a   : > { %294 = vst [vmem:[#allocation2 + $0x60] sm:$0xff] (!%p1125_p9), %v1538_v0  ;;  %295 = vst [vmem:[#allocation2 + $0x68] sm:$0xff] (!%p1125_p9), %v1538_v0 }
  0x5b   : > { %296 = vst [vmem:[#allocation2 + $0x70] sm:$0xff] %v1538_v0  ;;  %297 = vst [vmem:[#allocation2 + $0x78] sm:$0xff] %v1538_v0 }
  0x5c PF: > { %v1289_v1 = vld [vmem:[%s1713_s25 + $0x4] ss:$8 sps:$4 sm:$0xff]   ;;  %v1293_v3 = vld [vmem:[%s1713_s25] ss:$8 sps:$4 sm:$0xff]   ;;  %v1295_v5 = vld [vmem:[%s1713_s25 + $0x14] ss:$8 sps:$4 sm:$0xff]  }
  0x5d   : > { %v1291_v2 = vld [vmem:[%s1713_s25 + $0x104] ss:$8 sps:$4 sm:$0xff]   ;;  %746 = vmatprep.subr.bf16.mxu1 %v1289_v1  ;;  %v1294_v4 = vld [vmem:[%s1713_s25 + $0x100] ss:$8 sps:$4 sm:$0xff]   ;;  %v1297_v6 = vld [vmem:[%s1713_s25 + $0x114] ss:$8 sps:$4 sm:$0xff]  }
  0x5e   : > { %819 = vmatprep.subr.bf16.mxu0 %v1291_v2  ;;  %747 = vmatpush1.bf16.msra.mxu1 %v1293_v3  ;;  %v1299_v7 = vld [vmem:[%s1713_s25 + $0x10] ss:$8 sps:$4 sm:$0xff]   ;;  %v1301_v9 = vld [vmem:[%s1713_s25 + $0x24] ss:$8 sps:$4 sm:$0xff]   ;;  %v1305_v11 = vld [vmem:[%s1713_s25 + $0x20] ss:$8 sps:$4 sm:$0xff]  }
  0x5f   : > { %820 = vmatpush1.bf16.msra.mxu0 %v1294_v4  ;;  %748 = vmatprep.subr.bf16.mxu1 %v1295_v5  ;;  %v1300_v8 = vld [vmem:[%s1713_s25 + $0x110] ss:$8 sps:$4 sm:$0xff]   ;;  %v1303_v10 = vld [vmem:[%s1713_s25 + $0x124] ss:$8 sps:$4 sm:$0xff]   ;;  %v1306_v12 = vld [vmem:[%s1713_s25 + $0x120] ss:$8 sps:$4 sm:$0xff]  }
  0x60   : > { %821 = vmatprep.subr.bf16.mxu0 %v1297_v6  ;;  %v1307_v13 = vld [vmem:[%s1713_s25 + $0x34] ss:$8 sps:$4 sm:$0xff]   ;;  %v1311_v15 = vld [vmem:[%s1713_s25 + $0x30] ss:$8 sps:$4 sm:$0xff]   ;;  %v1313_v17 = vld [vmem:[%s1713_s25 + $0x44] ss:$8 sps:$4 sm:$0xff]  }
  0x61   : > { %v1309_v14 = vld [vmem:[%s1713_s25 + $0x134] ss:$8 sps:$4 sm:$0xff]   ;;  %v1312_v16 = vld [vmem:[%s1713_s25 + $0x130] ss:$8 sps:$4 sm:$0xff]   ;;  %v1315_v18 = vld [vmem:[%s1713_s25 + $0x144] ss:$8 sps:$4 sm:$0xff]  }
  0x62   : > { %749 = vmatpush1.bf16.msra.mxu1 %v1299_v7  ;;  %v1317_v19 = vld [vmem:[%s1713_s25 + $0x40] ss:$8 sps:$4 sm:$0xff]   ;;  %v1319_v21 = vld [vmem:[%s1713_s25 + $0x54] ss:$8 sps:$4 sm:$0xff]   ;;  %v1323_v23 = vld [vmem:[%s1713_s25 + $0x50] ss:$8 sps:$4 sm:$0xff]  }
  0x63   : > { %822 = vmatpush1.bf16.msra.mxu0 %v1300_v8  ;;  %750 = vmatprep.subr.bf16.mxu1 %v1301_v9  ;;  %v1318_v20 = vld [vmem:[%s1713_s25 + $0x140] ss:$8 sps:$4 sm:$0xff]   ;;  %v1321_v22 = vld [vmem:[%s1713_s25 + $0x154] ss:$8 sps:$4 sm:$0xff]   ;;  %v1324_v24 = vld [vmem:[%s1713_s25 + $0x150] ss:$8 sps:$4 sm:$0xff]  }
  0x64   : > { %823 = vmatprep.subr.bf16.mxu0 %v1303_v10  ;;  %v1325_v25 = vld [vmem:[%s1713_s25 + $0x64] ss:$8 sps:$4 sm:$0xff]   ;;  %v1329_v27 = vld [vmem:[%s1713_s25 + $0x60] ss:$8 sps:$4 sm:$0xff]   ;;  %v1331_v29 = vld [vmem:[%s1713_s25 + $0x74] ss:$8 sps:$4 sm:$0xff]  }
  0x65   : > { %v1327_v26 = vld [vmem:[%s1713_s25 + $0x164] ss:$8 sps:$4 sm:$0xff]   ;;  %v1330_v28 = vld [vmem:[%s1713_s25 + $0x160] ss:$8 sps:$4 sm:$0xff]   ;;  %v1333_v30 = vld [vmem:[%s1713_s25 + $0x174] ss:$8 sps:$4 sm:$0xff]  }
  0x66   : > { %751 = vmatpush1.bf16.msra.mxu1 %v1305_v11  ;;  %v1335_v31 = vld [vmem:[%s1713_s25 + $0x70] ss:$8 sps:$4 sm:$0xff]   ;;  %v1337_v33 = vld [vmem:[%s1713_s25 + $0x84] ss:$8 sps:$4 sm:$0xff]   ;;  %v1341_v35 = vld [vmem:[%s1713_s25 + $0x80] ss:$8 sps:$4 sm:$0xff]  }
  0x67   : > { %824 = vmatpush1.bf16.msra.mxu0 %v1306_v12  ;;  %752 = vmatprep.subr.bf16.mxu1 %v1307_v13  ;;  %v1336_v32 = vld [vmem:[%s1713_s25 + $0x170] ss:$8 sps:$4 sm:$0xff]   ;;  %v1339_v34 = vld [vmem:[%s1713_s25 + $0x184] ss:$8 sps:$4 sm:$0xff]   ;;  %v1342_v36 = vld [vmem:[%s1713_s25 + $0x180] ss:$8 sps:$4 sm:$0xff]  }
  0x68   : > { %825 = vmatprep.subr.bf16.mxu0 %v1309_v14  ;;  %v1343_v37 = vld [vmem:[%s1713_s25 + $0x94] ss:$8 sps:$4 sm:$0xff]   ;;  %v1347_v39 = vld [vmem:[%s1713_s25 + $0x90] ss:$8 sps:$4 sm:$0xff]   ;;  %v1349_v41 = vld [vmem:[%s1713_s25 + $0xa4] ss:$8 sps:$4 sm:$0xff]  }
  0x69   : > { %v1345_v38 = vld [vmem:[%s1713_s25 + $0x194] ss:$8 sps:$4 sm:$0xff]   ;;  %v1348_v40 = vld [vmem:[%s1713_s25 + $0x190] ss:$8 sps:$4 sm:$0xff]   ;;  %v1351_v42 = vld [vmem:[%s1713_s25 + $0x1a4] ss:$8 sps:$4 sm:$0xff]  }
  0x6a   : > { %753 = vmatpush1.bf16.msra.mxu1 %v1311_v15  ;;  %v1353_v43 = vld [vmem:[%s1713_s25 + $0xa0] ss:$8 sps:$4 sm:$0xff]   ;;  %v1355_v45 = vld [vmem:[%s1713_s25 + $0xb4] ss:$8 sps:$4 sm:$0xff]   ;;  %v1359_v51 = vld [vmem:[%s1713_s25 + $0xb0] ss:$8 sps:$4 sm:$0xff]  }
  0x6b   : > { %826 = vmatpush1.bf16.msra.mxu0 %v1312_v16  ;;  %754 = vmatprep.subr.bf16.mxu1 %v1313_v17  ;;  %v1354_v44 = vld [vmem:[%s1713_s25 + $0x1a0] ss:$8 sps:$4 sm:$0xff]   ;;  %v1357_v46 = vld [vmem:[%s1713_s25 + $0x1b4] ss:$8 sps:$4 sm:$0xff]   ;;  %v1360_v52 = vld [vmem:[%s1713_s25 + $0x1b0] ss:$8 sps:$4 sm:$0xff]  }
  0x6c   : > { %827 = vmatprep.subr.bf16.mxu0 %v1315_v18  ;;  %v315_v47 = vld [vmem:[%s1707_s27 + $0x8] sm:$0xff]  ;;  %v317_v49 = vld [vmem:[%s1707_s27 + $0x18] sm:$0xff]  ;;  %v314_v7 = vld [vmem:[%s1707_s27] sm:$0xff]  ;;  %p1190_p12 = scmp.ne.s32.totalorder %s1521_s15, 1 }
  0x6d   : > { %v319_v48 = vld [vmem:[%s1707_s27 + $0x28] sm:$0xff]  ;;  %v321_v50 = vld [vmem:[%s1707_s27 + $0x38] sm:$0xff]  ;;  %v318_v8 = vld [vmem:[%s1707_s27 + $0x20] sm:$0xff] }
  0x6e   : > { %755 = vmatpush1.bf16.msra.mxu1 %v1317_v19  ;;  %v347_v53 = vpack.c.bf16 %v319_v48, %v315_v47  ;;  %v349_v54 = vpack.c.bf16 %v321_v50, %v317_v49  ;;  %v1361_v55 = vld [vmem:[%s1713_s25 + $0xc4] ss:$8 sps:$4 sm:$0xff]   ;;  %v1365_v57 = vld [vmem:[%s1713_s25 + $0xc0] ss:$8 sps:$4 sm:$0xff]   ;;  %v1367_v59 = vld [vmem:[%s1713_s25 + $0xd4] ss:$8 sps:$4 sm:$0xff]   ;;  %v346_v15 = vpack.c.bf16 %v318_v8, %v314_v7 }
  0x6f   : > { %828 = vmatpush1.bf16.msra.mxu0 %v1318_v20  ;;  %756 = vmatprep.subr.bf16.mxu1 %v1319_v21  ;;  %v1363_v56 = vld [vmem:[%s1713_s25 + $0x1c4] ss:$8 sps:$4 sm:$0xff]   ;;  %v1366_v58 = vld [vmem:[%s1713_s25 + $0x1c0] ss:$8 sps:$4 sm:$0xff]   ;;  %v1369_v60 = vld [vmem:[%s1713_s25 + $0x1d4] ss:$8 sps:$4 sm:$0xff]  }
  0x70   : > { %829 = vmatprep.subr.bf16.mxu0 %v1321_v22  ;;  %778 = vmatprep.mubr.bf16.mxu1 %v347_v53  ;;  %v1371_v61 = vld [vmem:[%s1713_s25 + $0xd0] ss:$8 sps:$4 sm:$0xff]   ;;  %v1373_v63 = vld [vmem:[%s1713_s25 + $0xe4] ss:$8 sps:$4 sm:$0xff]   ;;  %v1377_v1 = vld [vmem:[%s1713_s25 + $0xe0] ss:$8 sps:$4 sm:$0xff]  }
  0x71   : > { %851 = vmatprep.mubr.bf16.mxu0 %v349_v54  ;;  %v1372_v62 = vld [vmem:[%s1713_s25 + $0x1d0] ss:$8 sps:$4 sm:$0xff]   ;;  %v1375_v0 = vld [vmem:[%s1713_s25 + $0x1e4] ss:$8 sps:$4 sm:$0xff]   ;;  %v1378_v2 = vld [vmem:[%s1713_s25 + $0x1e0] ss:$8 sps:$4 sm:$0xff]  }
  0x72   : > { %757 = vmatpush1.bf16.msra.mxu1 %v1323_v23  ;;  %v1379_v3 = vld [vmem:[%s1713_s25 + $0xf4] ss:$8 sps:$4 sm:$0xff]   ;;  %v1383_v5 = vld [vmem:[%s1713_s25 + $0xf0] ss:$8 sps:$4 sm:$0xff]   ;;  %v323_v11 = vld [vmem:[%s1707_s27 + $0x48] sm:$0xff] }
  0x73   : > { %830 = vmatpush1.bf16.msra.mxu0 %v1324_v24  ;;  %758 = vmatprep.subr.bf16.mxu1 %v1325_v25  ;;  %v1381_v4 = vld [vmem:[%s1713_s25 + $0x1f4] ss:$8 sps:$4 sm:$0xff]   ;;  %v1384_v6 = vld [vmem:[%s1713_s25 + $0x1f0] ss:$8 sps:$4 sm:$0xff]   ;;  %v327_v12 = vld [vmem:[%s1707_s27 + $0x68] sm:$0xff] }
  0x74   : > { %831 = vmatprep.subr.bf16.mxu0 %v1327_v26  ;;  %v316_v9 = vld [vmem:[%s1707_s27 + $0x10] sm:$0xff]  ;;  %v325_v13 = vld [vmem:[%s1707_s27 + $0x58] sm:$0xff]  ;;  %v351_v17 = vpack.c.bf16 %v327_v12, %v323_v11  ;;  %v322_v19 = vld [vmem:[%s1707_s27 + $0x40] sm:$0xff] }
  0x75   : > { %v320_v10 = vld [vmem:[%s1707_s27 + $0x30] sm:$0xff]  ;;  %v329_v14 = vld [vmem:[%s1707_s27 + $0x78] sm:$0xff]  ;;  %v326_v20 = vld [vmem:[%s1707_s27 + $0x60] sm:$0xff] }
  0x76   : > { %759 = vmatpush1.bf16.msra.mxu1 %v1329_v27  ;;  %v348_v16 = vpack.c.bf16 %v320_v10, %v316_v9  ;;  %v353_v18 = vpack.c.bf16 %v329_v14, %v325_v13  ;;  %v324_v21 = vld [vmem:[%s1707_s27 + $0x50] sm:$0xff]  ;;  %v331_v23 = vld [vmem:[%s1707_s27 + $0x88] sm:$0xff]  ;;  %v333_v25 = vld [vmem:[%s1707_s27 + $0x98] sm:$0xff]  ;;  %v350_v27 = vpack.c.bf16 %v326_v20, %v322_v19 }
  0x77   : > { %832 = vmatpush1.bf16.msra.mxu0 %v1330_v28  ;;  %760 = vmatprep.subr.bf16.mxu1 %v1331_v29  ;;  %v328_v22 = vld [vmem:[%s1707_s27 + $0x70] sm:$0xff]  ;;  %v335_v24 = vld [vmem:[%s1707_s27 + $0xa8] sm:$0xff]  ;;  %v337_v26 = vld [vmem:[%s1707_s27 + $0xb8] sm:$0xff] }
  0x78   : > { %833 = vmatprep.subr.bf16.mxu0 %v1333_v30  ;;  %v352_v28 = vpack.c.bf16 %v328_v22, %v324_v21  ;;  %v355_v29 = vpack.c.bf16 %v335_v24, %v331_v23  ;;  %v357_v30 = vpack.c.bf16 %v337_v26, %v333_v25  ;;  %v298_v50 = vld [vmem:[#allocation2] sm:$0xff]  ;;  %v299_v54 = vld [vmem:[#allocation2 + $0x8] sm:$0xff]  ;;  %v304_v14 = vld [vmem:[#allocation2 + $0x30] sm:$0xff] }
  0x79   : > { %v303_v10 = vld [vmem:[#allocation2 + $0x28] sm:$0xff]  ;;  %v305_v19 = vld [vmem:[#allocation2 + $0x38] sm:$0xff]  ;;  %v306_v26 = vld [vmem:[#allocation2 + $0x40] sm:$0xff] }
  0x7a   : > { %761 = vmatpush1.bf16.msra.mxu1 %v1335_v31  ;;  %v330_v31 = vld [vmem:[%s1707_s27 + $0x80] sm:$0xff] }
  0x7b   : > { %834 = vmatpush1.bf16.msra.mxu0 %v1336_v32  ;;  %762 = vmatprep.subr.bf16.mxu1 %v1337_v33  ;;  %v334_v32 = vld [vmem:[%s1707_s27 + $0xa0] sm:$0xff]  ;;  %v332_v33 = vld [vmem:[%s1707_s27 + $0x90] sm:$0xff] }
  0x7c   : > { %835 = vmatprep.subr.bf16.mxu0 %v1339_v34  ;;  %v336_v34 = vld [vmem:[%s1707_s27 + $0xb0] sm:$0xff] }
  0x7e   : > { %763 = vmatpush1.bf16.msra.mxu1 %v1341_v35  ;;  %v339_v35 = vld [vmem:[%s1707_s27 + $0xc8] sm:$0xff] }
  0x7f   : > { %836 = vmatpush1.bf16.msra.mxu0 %v1342_v36  ;;  %764 = vmatprep.subr.bf16.mxu1 %v1343_v37  ;;  %v343_v36 = vld [vmem:[%s1707_s27 + $0xe8] sm:$0xff]  ;;  %v341_v37 = vld [vmem:[%s1707_s27 + $0xd8] sm:$0xff] }
  0x80   : > { %837 = vmatprep.subr.bf16.mxu0 %v1345_v38  ;;  %v345_v38 = vld [vmem:[%s1707_s27 + $0xf8] sm:$0xff] }
  0x82   : > { %765 = vmatpush1.bf16.msra.mxu1 %v1347_v39  ;;  %v354_v39 = vpack.c.bf16 %v334_v32, %v330_v31 }
  0x83   : > { %838 = vmatpush1.bf16.msra.mxu0 %v1348_v40  ;;  %766 = vmatprep.subr.bf16.mxu1 %v1349_v41  ;;  %v356_v40 = vpack.c.bf16 %v336_v34, %v332_v33  ;;  %v359_v41 = vpack.c.bf16 %v343_v36, %v339_v35  ;;  %v308_v34 = vld [vmem:[#allocation2 + $0x50] sm:$0xff] }
  0x84   : > { %839 = vmatprep.subr.bf16.mxu0 %v1351_v42  ;;  %v361_v42 = vpack.c.bf16 %v345_v38, %v341_v37 }
  0x86   : > { %767 = vmatpush1.bf16.msra.mxu1 %v1353_v43  ;;  %v338_v43 = vld [vmem:[%s1707_s27 + $0xc0] sm:$0xff] }
  0x87   : > { %840 = vmatpush1.bf16.msra.mxu0 %v1354_v44  ;;  %768 = vmatprep.subr.bf16.mxu1 %v1355_v45  ;;  %v342_v44 = vld [vmem:[%s1707_s27 + $0xe0] sm:$0xff]  ;;  %v340_v45 = vld [vmem:[%s1707_s27 + $0xd0] sm:$0xff] }
  0x88   : > { %841 = vmatprep.subr.bf16.mxu0 %v1357_v46  ;;  %v344_v46 = vld [vmem:[%s1707_s27 + $0xf0] sm:$0xff]  ;;  %v358_v47 = vpack.c.bf16 %v342_v44, %v338_v43 }
  0x89   : > { %v360_v48 = vpack.c.bf16 %v344_v46, %v340_v45  ;;  %v310_v46 = vld [vmem:[#allocation2 + $0x60] sm:$0xff] }
  0x8a   : > { %769 = vmatpush1.bf16.msra.mxu1 %v1359_v51 }
  0x8b   : > { %842 = vmatpush1.bf16.msra.mxu0 %v1360_v52  ;;  %770 = vmatprep.subr.bf16.mxu1 %v1361_v55 }
  0x8c   : > { %843 = vmatprep.subr.bf16.mxu0 %v1363_v56 }
  0x8e   : > { %771 = vmatpush1.bf16.msra.mxu1 %v1365_v57 }
  0x8f   : > { %844 = vmatpush1.bf16.msra.mxu0 %v1366_v58  ;;  %772 = vmatprep.subr.bf16.mxu1 %v1367_v59  ;;  %v300_v58 = vld [vmem:[#allocation2 + $0x10] sm:$0xff] }
  0x90   : > { %845 = vmatprep.subr.bf16.mxu0 %v1369_v60 }
  0x92   : > { %773 = vmatpush1.bf16.msra.mxu1 %v1371_v61 }
  0x93   : > { %846 = vmatpush1.bf16.msra.mxu0 %v1372_v62  ;;  %774 = vmatprep.subr.bf16.mxu1 %v1373_v63  ;;  %v301_v63 = vld [vmem:[#allocation2 + $0x18] sm:$0xff] }
  0x94   : > { %847 = vmatprep.subr.bf16.mxu0 %v1375_v0 }
  0x96   : > { %775 = vmatpush1.bf16.msra.mxu1 %v1377_v1 }
  0x97   : > { %848 = vmatpush1.bf16.msra.mxu0 %v1378_v2  ;;  %776 = vmatprep.subr.bf16.mxu1 %v1379_v3 }
  0x98   : > { %849 = vmatprep.subr.bf16.mxu0 %v1381_v4 }
  0x9a   : > { %777 = vmatpush1.bf16.msra.mxu1 %v1383_v5 }
  0x9b   : > { %850 = vmatpush1.bf16.msra.mxu0 %v1384_v6  ;;  %v302_v6 = vld [vmem:[#allocation2 + $0x20] sm:$0xff] }
  0x9d   : > { %779 = vmatmul.mubr.bf16.vlgmr.msra.gmra.mrb[0].mxu1 %v346_v15 }
  0x9e   : > { %852 = vmatmul.mubr.bf16.vlgmr.msra.gmra.mrb[0].mxu0 %v348_v16  ;;  %788 = vmatprep.mubr.bf16.mxu1 %v351_v17 }
  0x9f   : > { %861 = vmatprep.mubr.bf16.mxu0 %v353_v18 }
  0xa5   : > { %789 = vmatmul.mubr.bf16.gmra.mrb[4].mxu1 %v350_v27 }
  0xa6   : > { %862 = vmatmul.mubr.bf16.gmra.mrb[4].mxu0 %v352_v28  ;;  %798 = vmatprep.mubr.bf16.mxu1 %v355_v29 }
  0xa7   : > { %871 = vmatprep.mubr.bf16.mxu0 %v357_v30  ;;  %v307_v30 = vld [vmem:[#allocation2 + $0x48] sm:$0xff] }
  0xad   : > { %799 = vmatmul.mubr.bf16.gmra.mrb[8].mxu1 %v354_v39  ;;  %v309_v39 = vld [vmem:[#allocation2 + $0x58] sm:$0xff] }
  0xae   : > { %872 = vmatmul.mubr.bf16.gmra.mrb[8].mxu0 %v356_v40  ;;  %808 = vmatprep.mubr.bf16.mxu1 %v359_v41 }
  0xaf   : > { %881 = vmatprep.mubr.bf16.mxu0 %v361_v42 }
  0xb5   : > { %809 = vmatmul.mubr.bf16.gmra.mrb[12].mxu1 %v358_v47 }
  0xb6   : > { %882 = vmatmul.mubr.bf16.gmra.mrb[12].mxu0 %v360_v48 }
 0x170   : > { %v780_v49 = vpop.f32.mrb[0].mxu1 }
 0x171   : > { %v853_v51 = vpop.f32.mrb[0].mxu0  ;;  %v782_v53 = vpop.f32.mrb[1].mxu1 }
 0x172   : > { %v854_v52 = vadd.f32 %v853_v51, %v780_v49  ;;  %v855_v55 = vpop.f32.mrb[1].mxu0  ;;  %v784_v57 = vpop.f32.mrb[2].mxu1 }
 0x173   : > { %v856_v56 = vadd.f32 %v855_v55, %v782_v53  ;;  %v857_v59 = vpop.f32.mrb[2].mxu0  ;;  %v786_v62 = vpop.f32.mrb[3].mxu1 }
 0x174   : > { %v892_v60 = vadd.f32 %v854_v52, %v298_v50  ;;  %v858_v61 = vadd.f32 %v857_v59, %v784_v57  ;;  %v859_v0 = vpop.f32.mrb[3].mxu0  ;;  %v311_v50 = vld [vmem:[#allocation2 + $0x68] sm:$0xff]  ;;  %v313_v59 = vld [vmem:[#allocation2 + $0x78] sm:$0xff] }
 0x175   : > { %v893_v1 = vadd.f32 %v856_v56, %v299_v54  ;;  %v860_v2 = vadd.f32 %v859_v0, %v786_v62  ;;  %v312_v54 = vld [vmem:[#allocation2 + $0x70] sm:$0xff] }
 0x176   : > { %908 = vst [vmem:[#allocation2] sm:$0xff] %v892_v60  ;;  %v894_v3 = vadd.f32 %v858_v61, %v300_v58 }
 0x177   : > { %909 = vst [vmem:[#allocation2 + $0x8] sm:$0xff] %v893_v1  ;;  %v895_v4 = vadd.f32 %v860_v2, %v301_v63  ;;  %v946_v1 = vlaneseq (!%p1190_p12) }
 0x178   : > { %910 = vst [vmem:[#allocation2 + $0x10] sm:$0xff] %v894_v3  ;;  %v790_v5 = vpop.f32.mrb[4].mxu1 }
 0x179   : > { %911 = vst [vmem:[#allocation2 + $0x18] sm:$0xff] %v895_v4  ;;  %v863_v7 = vpop.f32.mrb[4].mxu0  ;;  %v792_v9 = vpop.f32.mrb[5].mxu1  ;;  %v947_v2 = vshrl.u32 (!%p1190_p12), %v946_v1, 7  ;;  %v944_v4 = vld [vmem:[%s1868_s2] sm:$0x3] (!%p1190_p12) }
 0x17a   : > { %v864_v8 = vadd.f32 %v863_v7, %v790_v5  ;;  %v865_v11 = vpop.f32.mrb[5].mxu0  ;;  %v794_v13 = vpop.f32.mrb[6].mxu1 }
 0x17b   : > { %v866_v12 = vadd.f32 %v865_v11, %v792_v9  ;;  %v867_v15 = vpop.f32.mrb[6].mxu0  ;;  %v796_v18 = vpop.f32.mrb[7].mxu1  ;;  %v948_v5 = vsub.s32 (!%p1190_p12), 0, %v947_v2  ;;  %v952_v7 = vsub.s32 (!%p1190_p12), 1, %v947_v2 }
 0x17c   : > { %v896_v16 = vadd.f32 %v864_v8, %v302_v6  ;;  %v868_v17 = vadd.f32 %v867_v15, %v794_v13  ;;  %v869_v20 = vpop.f32.mrb[7].mxu0 }
 0x17d   : > { %v897_v21 = vadd.f32 %v866_v12, %v303_v10  ;;  %v870_v22 = vadd.f32 %v869_v20, %v796_v18  ;;  %v928_v3 = vld [vmem:[#allocation2] sm:$0xff] (!%p1190_p12)  ;;  %v949_v13 = vrot.slane (!%p1190_p12), %v944_v4, %v948_v5 }
 0x17e   : > { %912 = vst [vmem:[#allocation2 + $0x20] sm:$0xff] %v896_v16  ;;  %v898_v23 = vadd.f32 %v868_v17, %v304_v14  ;;  %v929_v6 = vld [vmem:[#allocation2 + $0x8] sm:$0xff] (!%p1190_p12)  ;;  %v953_v14 = vrot.slane (!%p1190_p12), %v944_v4, %v952_v7 }
 0x17f   : > { %913 = vst [vmem:[#allocation2 + $0x28] sm:$0xff] %v897_v21  ;;  %v899_v24 = vadd.f32 %v870_v22, %v305_v19  ;;  %v930_v8 = vld [vmem:[#allocation2 + $0x10] sm:$0xff] (!%p1190_p12)  ;;  %v956_v21 = vadd.f32 (!%p1190_p12), %v949_v13, %v928_v3 }
 0x180   : > { %914 = vst [vmem:[#allocation2 + $0x30] sm:$0xff] %v898_v23  ;;  %v800_v25 = vpop.f32.mrb[8].mxu1  ;;  %v931_v9 = vld [vmem:[#allocation2 + $0x18] sm:$0xff] (!%p1190_p12)  ;;  %v957_v22 = vadd.f32 (!%p1190_p12), %v953_v14, %v929_v6  ;;  %v958_v23 = vadd.f32 (!%p1190_p12), %v949_v13, %v930_v8 }
 0x181   : > { %915 = vst [vmem:[#allocation2 + $0x38] sm:$0xff] %v899_v24  ;;  %v873_v27 = vpop.f32.mrb[8].mxu0  ;;  %v802_v29 = vpop.f32.mrb[9].mxu1  ;;  %v959_v24 = vadd.f32 (!%p1190_p12), %v953_v14, %v931_v9  ;;  %972 = vst [vmem:[#allocation8] sm:$0xff] (!%p1190_p12), %v956_v21 }
 0x182   : > { %v874_v28 = vadd.f32 %v873_v27, %v800_v25  ;;  %v875_v31 = vpop.f32.mrb[9].mxu0  ;;  %v804_v33 = vpop.f32.mrb[10].mxu1  ;;  %973 = vst [vmem:[#allocation8 + $0x8] sm:$0xff] (!%p1190_p12), %v957_v22  ;;  %974 = vst [vmem:[#allocation8 + $0x10] sm:$0xff] (!%p1190_p12), %v958_v23 }
 0x183   : > { %v876_v32 = vadd.f32 %v875_v31, %v802_v29  ;;  %v877_v35 = vpop.f32.mrb[10].mxu0  ;;  %v806_v38 = vpop.f32.mrb[11].mxu1  ;;  %975 = vst [vmem:[#allocation8 + $0x18] sm:$0xff] (!%p1190_p12), %v959_v24 }
 0x184   : > { %v900_v36 = vadd.f32 %v874_v28, %v306_v26  ;;  %v878_v37 = vadd.f32 %v877_v35, %v804_v33  ;;  %v879_v40 = vpop.f32.mrb[11].mxu0 }
 0x185   : > { %v901_v41 = vadd.f32 %v876_v32, %v307_v30  ;;  %v880_v42 = vadd.f32 %v879_v40, %v806_v38  ;;  %v932_v10 = vld [vmem:[#allocation2 + $0x20] sm:$0xff] (!%p1190_p12) }
 0x186   : > { %916 = vst [vmem:[#allocation2 + $0x40] sm:$0xff] %v900_v36  ;;  %v902_v43 = vadd.f32 %v878_v37, %v308_v34  ;;  %v933_v11 = vld [vmem:[#allocation2 + $0x28] sm:$0xff] (!%p1190_p12)  ;;  %v960_v28 = vadd.f32 (!%p1190_p12), %v949_v13, %v932_v10 }
 0x187   : > { %917 = vst [vmem:[#allocation2 + $0x48] sm:$0xff] %v901_v41  ;;  %v903_v44 = vadd.f32 %v880_v42, %v309_v39  ;;  %v934_v12 = vld [vmem:[#allocation2 + $0x30] sm:$0xff] (!%p1190_p12)  ;;  %v961_v29 = vadd.f32 (!%p1190_p12), %v953_v14, %v933_v11 }
 0x188   : > { %918 = vst [vmem:[#allocation2 + $0x50] sm:$0xff] %v902_v43  ;;  %v810_v45 = vpop.f32.mrb[12].mxu1  ;;  %v935_v15 = vld [vmem:[#allocation2 + $0x38] sm:$0xff] (!%p1190_p12)  ;;  %v962_v30 = vadd.f32 (!%p1190_p12), %v949_v13, %v934_v12  ;;  %976 = vst [vmem:[#allocation8 + $0x20] sm:$0xff] (!%p1190_p12), %v960_v28 }
 0x189   : > { %919 = vst [vmem:[#allocation2 + $0x58] sm:$0xff] %v903_v44  ;;  %v883_v47 = vpop.f32.mrb[12].mxu0  ;;  %v812_v49 = vpop.f32.mrb[13].mxu1  ;;  %v963_v31 = vadd.f32 (!%p1190_p12), %v953_v14, %v935_v15  ;;  %977 = vst [vmem:[#allocation8 + $0x28] sm:$0xff] (!%p1190_p12), %v961_v29 }
 0x18a   : > { %v884_v48 = vadd.f32 %v883_v47, %v810_v45  ;;  %v885_v51 = vpop.f32.mrb[13].mxu0  ;;  %v814_v53 = vpop.f32.mrb[14].mxu1  ;;  %978 = vst [vmem:[#allocation8 + $0x30] sm:$0xff] (!%p1190_p12), %v962_v30 }
 0x18b   : > { %v886_v52 = vadd.f32 %v885_v51, %v812_v49  ;;  %v887_v55 = vpop.f32.mrb[14].mxu0  ;;  %v816_v58 = vpop.f32.mrb[15].mxu1  ;;  %927 = sbr.rel (%p1190_p12) target bundleno = 412 (0x19c), region = 48  ;;  %979 = vst [vmem:[#allocation8 + $0x38] sm:$0xff] (!%p1190_p12), %v963_v31 }
 0x18c   : > { %v904_v56 = vadd.f32 %v884_v48, %v310_v46  ;;  %v888_v57 = vadd.f32 %v887_v55, %v814_v53  ;;  %v889_v60 = vpop.f32.mrb[15].mxu0 }
 0x18d   : > { %v905_v61 = vadd.f32 %v886_v52, %v311_v50  ;;  %v890_v62 = vadd.f32 %v889_v60, %v816_v58  ;;  %v936_v16 = vld [vmem:[#allocation2 + $0x40] sm:$0xff] (!%p1190_p12) }
 0x18e   : > { %920 = vst [vmem:[#allocation2 + $0x60] sm:$0xff] %v904_v56  ;;  %v906_v63 = vadd.f32 %v888_v57, %v312_v54  ;;  %v937_v17 = vld [vmem:[#allocation2 + $0x48] sm:$0xff] (!%p1190_p12)  ;;  %v964_v32 = vadd.f32 (!%p1190_p12), %v949_v13, %v936_v16 }
 0x18f   : > { %921 = vst [vmem:[#allocation2 + $0x68] sm:$0xff] %v905_v61  ;;  %v907_v0 = vadd.f32 %v890_v62, %v313_v59  ;;  %v938_v18 = vld [vmem:[#allocation2 + $0x50] sm:$0xff] (!%p1190_p12)  ;;  %v965_v33 = vadd.f32 (!%p1190_p12), %v953_v14, %v937_v17 }
 0x190   : > { %922 = vst [vmem:[#allocation2 + $0x70] sm:$0xff] %v906_v63  ;;  %v939_v19 = vld [vmem:[#allocation2 + $0x58] sm:$0xff] (!%p1190_p12)  ;;  %v966_v34 = vadd.f32 (!%p1190_p12), %v949_v13, %v938_v18  ;;  %980 = vst [vmem:[#allocation8 + $0x40] sm:$0xff] (!%p1190_p12), %v964_v32 }
 0x191   : > { %923 = vst [vmem:[#allocation2 + $0x78] sm:$0xff] %v907_v0  ;;  %v967_v35 = vadd.f32 (!%p1190_p12), %v953_v14, %v939_v19  ;;  %981 = vst [vmem:[#allocation8 + $0x48] sm:$0xff] (!%p1190_p12), %v965_v33 }
 0x192   : > { %982 = vst [vmem:[#allocation8 + $0x50] sm:$0xff] %v966_v34 }
 0x193   : > { %983 = vst [vmem:[#allocation8 + $0x58] sm:$0xff] %v967_v35 }
 0x195   : > { %v940_v20 = vld [vmem:[#allocation2 + $0x60] sm:$0xff] }
 0x196   : > { %v941_v25 = vld [vmem:[#allocation2 + $0x68] sm:$0xff]  ;;  %v968_v36 = vadd.f32 %v949_v13, %v940_v20 }
 0x197   : > { %v942_v26 = vld [vmem:[#allocation2 + $0x70] sm:$0xff]  ;;  %v969_v37 = vadd.f32 %v953_v14, %v941_v25 }
 0x198   : > { %v943_v27 = vld [vmem:[#allocation2 + $0x78] sm:$0xff]  ;;  %v970_v38 = vadd.f32 %v949_v13, %v942_v26  ;;  %984 = vst [vmem:[#allocation8 + $0x60] sm:$0xff] %v968_v36 }
 0x199   : > { %v971_v39 = vadd.f32 %v953_v14, %v943_v27  ;;  %985 = vst [vmem:[#allocation8 + $0x68] sm:$0xff] %v969_v37 }
 0x19a   : > { %986 = vst [vmem:[#allocation8 + $0x70] sm:$0xff] %v970_v38 }
 0x19b   : > { %987 = vst [vmem:[#allocation8 + $0x78] sm:$0xff] %v971_v39 }
 0x19c PF: > { %p1822_p4 = scmp.eq.s32.totalorder %s1111_s18, 1  ;;  %s1539_s20 = smov [#allocation8]  }
 0x19d   : > { %s1000_s22 = sshll.u32 %s1539_s20, 4  ;;  %s1001_s22 = int_to_ptr.vmem [resolvable:$true] %s1000_s22 }
 0x19e   : > { %s1445_s30 = scalar_lea.vmem %s1001_s22, 2048  ;;  %p1452_p0 = scmp.lt.s32.totalorder %s1001_s22, %s1001_s22 }
 0x19f   : > { %p1446_p8 = scmp.ne.s32.totalorder %s1001_s22, %s1445_s30  ;;  %p1453_p10 = scmp.lt.s32.totalorder %s1445_s30, %s1445_s30 }
 0x1a1   : > { %p1447_p2 = pnand %p1446_p8, %p1822_p4  ;;  %p1454_p5 = por %p1453_p10, %p1452_p0 }
 0x1a3   : > { %p1448_p3 = pneg %p1447_p2 }
 0x1a5   : > { %p1455_p6 = pnand %p1454_p5, %p1448_p3 }
 0x1a7   : > { %1458 = shalt.err (!%p1455_p6)
}
 0x1a8   : > { %s1459_s18 = scalar_lea.hbm %s1869_s3, 2048 }
 0x1a9   : > { %p1460_p11 = scmp.ne.s32.totalorder %s1869_s3, %s1459_s18  ;;  %p1465_p7 = scmp.lt.u32.totalorder %s1459_s18, %s1869_s3 }
 0x1ab   : > { %p1461_p13 = pnand %p1460_p11, %p1822_p4 }
 0x1ad   : > { %p1462_p1 = pneg %p1461_p13 }
 0x1af   : > { %p1467_p9 = pnand %p1465_p7, %p1462_p1 }
 0x1b1   : > { %1470 = shalt.err (!%p1467_p9)
}
 0x1b2   : > { %s1540_s21 = smov 256   ;;  %s1541_s5 = smov 16  }
 0x1b3   : > { %1219 = dma.vmem_to_hbm [thread:$0]  (%p1822_p4), %s1001_s22, 2048, %s1869_s3, [#allocation5], %s1540_s21, %s1540_s21, %s1541_s5  }
 0x1b4   : > { %1504 = dma.done.wait (%p1822_p4), [#allocation5], 2048  }
 0x1b5   : > { %1506 = vsyncadd (%p1822_p4), [#allocation5], 4294965248 }
 0x1b6 PF: > { %s20_s17 = sadd.s32 1, %s1529_s17   ;;  %s1878_s12 = smov %s1513_s13 }
 0x1b7   : > { %p17_p12 = scmp.ge.s32.totalorder %s20_s17, 4   ;;  %s1879_s13 = smov %s1517_s14 }
 0x1b8   : > { %s1880_s14 = smov %s1613_s24  ;;  %s1881_s15 = smov %s1525_s16 }
 0x1b9   : > { %s1882_s16 = smov %s1884_s19  ;;  %19 = sbr.rel (!%p17_p12) target bundleno = 7 (0x7), region = 94 }
 0x1c0   :  { %1016 = vsyncpa [#allocation4], 1 }
 0x1c1   :  { %1018 = vsyncpa [#allocation4 + $0x1], 1 }
 0x1c2   :  { %1019 = vsyncpa [#allocation7], 1 }
 0x1c3   :  { %1021 = vsyncpa [#allocation7 + $0x1], 1 }
 0x1c4   :  { %1022 = vsyncpa [#allocation5], 1 }
 0x1c5   :  { %1024 = vsyncpa [#allocation5 + $0x1], 1 }

</bundles_post_ra>
